<compile_context>
chip_gen: v6e
topology: v6e:2x2x1
jax: 0.10.0
libtpu: 0.0.40
codegen_flags: <defaults>
</compile_context>

<pallas_src>
import functools

import jax
import jax.numpy as jnp
from jax.experimental import pallas as pl
from jax.experimental.pallas import tpu as pltpu


def _ce_kernel(logits_ref, labels_ref, out_ref, m_sc, l_sc, p_sc,
               *, n_total, c_total, has_c_tail):
    # logits_ref: (TILE_N, TILE_C) in VMEM, native dtype (bf16 / f32)
    # labels_ref: (TILE_N, 1) int32 in VMEM
    # out_ref:    (1, 1) f32 in SMEM -- partial loss sum for this N tile
    # m_sc/l_sc/p_sc: (TILE_N, 1) f32 VMEM scratch (running max / exp-sum / picked logit)
    i = pl.program_id(0)
    j = pl.program_id(1)
    tile_n, tile_c = logits_ref.shape

    @pl.when(j == 0)
    def _():
        m_sc[...] = jnp.full_like(m_sc, -jnp.inf)
        l_sc[...] = jnp.zeros_like(l_sc)
        p_sc[...] = jnp.zeros_like(p_sc)

    x = logits_ref[...]                                  # native dtype, no full-tile upcast
    labels = labels_ref[...]                             # (TILE_N, 1) int32

    # Block-local column index; shift the (TILE_N, 1) labels instead of the full-tile iota.
    col = jax.lax.broadcasted_iota(jnp.int32, x.shape, 1)
    labels_local = labels - j * tile_c                   # (TILE_N, 1)

    if has_c_tail:
        # Mask padded tail columns of the last C block: -inf into the max, which makes
        # exp(x - m_new) == 0 for them below. Scalar c_valid keeps this one cmp + select.
        c_valid = c_total - j * tile_c
        x = jnp.where(col < c_valid, x, jnp.asarray(-jnp.inf, dtype=x.dtype))

    # Block max and picked-label logit in the source dtype (exact: max / single pick),
    # only the (TILE_N, 1) results widen to f32.
    m_blk = jnp.max(x, axis=-1, keepdims=True).astype(jnp.float32)
    picked_blk = jnp.sum(
        jnp.where(col == labels_local, x, jnp.zeros((), dtype=x.dtype)),
        axis=-1, keepdims=True).astype(jnp.float32)

    # Online logsumexp update across the class-axis grid (flash-attention style).
    m_new = jnp.maximum(m_sc[...], m_blk)
    alpha = jnp.exp(m_sc[...] - m_new)
    # Upcast only inside the exp expression (the only place f32 precision matters).
    e = jnp.exp(x.astype(jnp.float32) - m_new)
    l_sc[...] = alpha * l_sc[...] + jnp.sum(e, axis=-1, keepdims=True)
    m_sc[...] = m_new
    p_sc[...] = p_sc[...] + picked_blk

    @pl.when(j == pl.num_programs(1) - 1)
    def _():
        lse = m_sc[...] + jnp.log(l_sc[...])              # (TILE_N, 1)
        per_row = lse - p_sc[...]                         # -log p(label)
        # Mask out padded rows of the last (partial) N tile (also kills NaN/inf there).
        row = jax.lax.broadcasted_iota(jnp.int32, per_row.shape, 0) + i * tile_n
        per_row = jnp.where(row < n_total, per_row, 0.0)
        out_ref[0, 0] = jnp.sum(per_row)


def _vmem_budget():
    """Generation-aware (total double-buffer budget, scoped VMEM limit) in bytes."""
    try:
        cap = pltpu.get_tpu_info().vmem_capacity_bytes
    except Exception:
        cap = 64 * 1024 * 1024                            # conservative (v7x per-TC)
    if cap >= 100 * 1024 * 1024:                          # v5e / v6e: 128 MiB physical
        return 32 * 1024 * 1024, 64 * 1024 * 1024         # ~16 MiB per logits buffer
    else:                                                 # v7x: 64 MiB per TC
        return 12 * 1024 * 1024, 48 * 1024 * 1024         # ~6 MiB per logits buffer


def cross_entropy_loss(logits: jax.Array, labels: jax.Array) -> jax.Array:
    """Mean cross-entropy over (N, C) logits and (N,) integer labels (torch default)."""
    n, c = logits.shape
    labels2d = labels.reshape(-1, 1).astype(jnp.int32)    # mirrors labels.reshape(-1).long()

    itemsize = jnp.dtype(logits.dtype).itemsize
    total_budget, vmem_limit = _vmem_budget()

    # --- class-axis tiling: fixed lane-aligned width + cdiv + tail masking ------------
    if c <= 8192:
        tile_c = c                                        # full dim: always a legal block
        has_c_tail = False
    else:
        tile_c = 4096                                     # lane-aligned, wide DMA bursts
        has_c_tail = (c % tile_c != 0)
    nc = pl.cdiv(c, tile_c)

    # --- row-axis tiling: fill the budget, including lane-padded scratch/labels -------
    # double-buffered logits: 2*tile_c*itemsize per row
    # 3x f32 (tile_n,1) scratch + 2x buffered int32 (tile_n,1) labels, all lane-padded
    # to 128 wide: 5 * 512 bytes per row.
    per_row_bytes = 2 * tile_c * itemsize + 5 * 512
    tile_n = max(8, (total_budget // per_row_bytes) // 8 * 8)
    if n <= tile_n:
        tile_n = n                                        # full dim -> legal block shape
    nn = pl.cdiv(n, tile_n)

    kernel = functools.partial(_ce_kernel, n_total=n, c_total=c, has_c_tail=has_c_tail)

    partials = pl.pallas_call(
        kernel,
        out_shape=jax.ShapeDtypeStruct((nn, 1), jnp.float32),
        grid_spec=pltpu.PrefetchScalarGridSpec(
            num_scalar_prefetch=0,
            grid=(nn, nc),                                # C (reduction) axis last
            in_specs=[
                pl.BlockSpec((tile_n, tile_c), lambda i, j: (i, j)),
                pl.BlockSpec((tile_n, 1), lambda i, j: (i, 0)),
            ],
            out_specs=pl.BlockSpec((1, 1), lambda i, j: (i, 0),
                                   memory_space=pltpu.SMEM),
            scratch_shapes=[pltpu.VMEM((tile_n, 1), jnp.float32)] * 3,
        ),
        compiler_params=pltpu.CompilerParams(
            dimension_semantics=("parallel", "arbitrary"),
            vmem_limit_bytes=vmem_limit,
        ),
    )(logits, labels2d)

    return jnp.sum(partials) / jnp.float32(n)


if __name__ == "__main__":
    key = jax.random.PRNGKey(0)
    k_logits, k_labels = jax.random.split(key)

    N, C = 8, 32                        # small classification problem: batch=8, classes=32
    logits = jax.random.normal(k_logits, (N, C), dtype=jnp.float32)
    labels = jax.random.randint(k_labels, (N,), 0, C, dtype=jnp.int32)

    loss = cross_entropy_loss(logits, labels)
    jax.block_until_ready(loss)

    # sanity check against a pure-JAX reference of nn.CrossEntropyLoss (mean reduction)
    ref = jnp.mean(
        jax.nn.logsumexp(logits, axis=-1) - logits[jnp.arange(N), labels]
    )
    assert jnp.allclose(loss, ref, rtol=1e-5, atol=1e-5), (loss, ref)

    print("KERNEL_OK")
</pallas_src>

<mosaic_0001>
module attributes {stable_mosaic.version = 11 : i64} {
  func.func @_ce_kernel(%arg0: i32, %arg1: i32, %arg2: memref<8x32xf32, #tpu.memory_space<vmem>>, %arg3: memref<8x1xi32, #tpu.memory_space<vmem>>, %arg4: memref<1x1xf32, #tpu.memory_space<smem>>, %arg5: memref<8x1xf32, #tpu.memory_space<vmem>>, %arg6: memref<8x1xf32, #tpu.memory_space<vmem>>, %arg7: memref<8x1xf32, #tpu.memory_space<vmem>>) attributes {dimension_semantics = [#tpu.dimension_semantics<parallel>, #tpu.dimension_semantics<arbitrary>], iteration_bounds = array<i64: 1, 1>, scalar_prefetch = 0 : i64, scratch_operands = 3 : i64, tpu.core_type = #tpu.core_type<tc>, window_params = [{transform_indices = @transform_0, window_bounds = array<i64: 8, 32>}, {transform_indices = @transform_1, window_bounds = array<i64: 8, 1>}, {transform_indices = @transform_2, window_bounds = array<i64: 1, 1>}]} {
    %c0_i32 = arith.constant 0 : i32
    %0 = arith.cmpi eq, %arg1, %c0_i32 : i32
    %1 = arith.extui %0 : i1 to i32
    %c0_i32_0 = arith.constant 0 : i32
    %2 = arith.cmpi ne, %1, %c0_i32_0 : i32
    scf.if %2 {
      %cst_23 = arith.constant 0xFF800000 : f32
      %38 = vector.broadcast %cst_23 : f32 to vector<8x1xf32>
      %c0_24 = arith.constant 0 : index
      %c0_25 = arith.constant 0 : index
      %39 = vector.load %arg5[%c0_24, %c0_25] : memref<8x1xf32, #tpu.memory_space<vmem>>, vector<8x1xf32>
      tpu.vector_store %arg5[%c0_24, %c0_25], %38 {strides = array<i32>} : memref<8x1xf32, #tpu.memory_space<vmem>>, vector<8x1xf32>,
      %cst_26 = arith.constant 0.000000e+00 : f32
      %40 = vector.broadcast %cst_26 : f32 to vector<8x1xf32>
      %c0_27 = arith.constant 0 : index
      %c0_28 = arith.constant 0 : index
      %41 = vector.load %arg6[%c0_27, %c0_28] : memref<8x1xf32, #tpu.memory_space<vmem>>, vector<8x1xf32>
      tpu.vector_store %arg6[%c0_27, %c0_28], %40 {strides = array<i32>} : memref<8x1xf32, #tpu.memory_space<vmem>>, vector<8x1xf32>,
      %cst_29 = arith.constant 0.000000e+00 : f32
      %42 = vector.broadcast %cst_29 : f32 to vector<8x1xf32>
      %c0_30 = arith.constant 0 : index
      %c0_31 = arith.constant 0 : index
      %43 = vector.load %arg7[%c0_30, %c0_31] : memref<8x1xf32, #tpu.memory_space<vmem>>, vector<8x1xf32>
      tpu.vector_store %arg7[%c0_30, %c0_31], %42 {strides = array<i32>} : memref<8x1xf32, #tpu.memory_space<vmem>>, vector<8x1xf32>,
    } else {
    }
    %c0 = arith.constant 0 : index
    %c0_1 = arith.constant 0 : index
    %3 = vector.load %arg2[%c0, %c0_1] : memref<8x32xf32, #tpu.memory_space<vmem>>, vector<8x32xf32>
    %c0_2 = arith.constant 0 : index
    %c0_3 = arith.constant 0 : index
    %4 = vector.load %arg3[%c0_2, %c0_3] : memref<8x1xi32, #tpu.memory_space<vmem>>, vector<8x1xi32>
    %5 = tpu.iota {dimensions = array<i32: 1>} : vector<8x32xi32>
    %c32_i32 = arith.constant 32 : i32
    %6 = arith.muli %arg1, %c32_i32 : i32
    %7 = vector.broadcast %6 : i32 to vector<8x1xi32>
    %8 = arith.subi %4, %7 : vector<8x1xi32>
    %cst = arith.constant dense<0xFF800000> : vector<8xf32>
    %9 = vector.multi_reduction <maximumf>, %3, %cst [1] : vector<8x32xf32> to vector<8xf32>
    %10 = vector.shape_cast %9 : vector<8xf32> to vector<8x1xf32>
    %11 = vector.broadcast %8 : vector<8x1xi32> to vector<8x32xi32>
    %12 = arith.cmpi eq, %5, %11 : vector<8x32xi32>
    %cst_4 = arith.constant 0.000000e+00 : f32
    %13 = vector.broadcast %cst_4 : f32 to vector<8x32xf32>
    %14 = arith.select %12, %3, %13 : vector<8x32xi1>, vector<8x32xf32>
    %cst_5 = arith.constant dense<0.000000e+00> : vector<8xf32>
    %15 = vector.multi_reduction <add>, %14, %cst_5 [1] : vector<8x32xf32> to vector<8xf32>
    %16 = vector.shape_cast %15 : vector<8xf32> to vector<8x1xf32>
    %c0_6 = arith.constant 0 : index
    %c0_7 = arith.constant 0 : index
    %17 = vector.load %arg5[%c0_6, %c0_7] : memref<8x1xf32, #tpu.memory_space<vmem>>, vector<8x1xf32>
    %18 = arith.maximumf %17, %10 : vector<8x1xf32>
    %c0_8 = arith.constant 0 : index
    %c0_9 = arith.constant 0 : index
    %19 = vector.load %arg5[%c0_8, %c0_9] : memref<8x1xf32, #tpu.memory_space<vmem>>, vector<8x1xf32>
    %20 = arith.subf %19, %18 : vector<8x1xf32>
    %21 = math.exp %20 : vector<8x1xf32>
    %22 = vector.broadcast %18 : vector<8x1xf32> to vector<8x32xf32>
    %23 = arith.subf %3, %22 : vector<8x32xf32>
    %24 = math.exp %23 : vector<8x32xf32>
    %c0_10 = arith.constant 0 : index
    %c0_11 = arith.constant 0 : index
    %25 = vector.load %arg6[%c0_10, %c0_11] : memref<8x1xf32, #tpu.memory_space<vmem>>, vector<8x1xf32>
    %26 = arith.mulf %21, %25 : vector<8x1xf32>
    %cst_12 = arith.constant dense<0.000000e+00> : vector<8xf32>
    %27 = vector.multi_reduction <add>, %24, %cst_12 [1] : vector<8x32xf32> to vector<8xf32>
    %28 = vector.shape_cast %27 : vector<8xf32> to vector<8x1xf32>
    %29 = arith.addf %26, %28 : vector<8x1xf32>
    %c0_13 = arith.constant 0 : index
    %c0_14 = arith.constant 0 : index
    %30 = vector.load %arg6[%c0_13, %c0_14] : memref<8x1xf32, #tpu.memory_space<vmem>>, vector<8x1xf32>
    tpu.vector_store %arg6[%c0_13, %c0_14], %29 {strides = array<i32>} : memref<8x1xf32, #tpu.memory_space<vmem>>, vector<8x1xf32>,
    %c0_15 = arith.constant 0 : index
    %c0_16 = arith.constant 0 : index
    %31 = vector.load %arg5[%c0_15, %c0_16] : memref<8x1xf32, #tpu.memory_space<vmem>>, vector<8x1xf32>
    tpu.vector_store %arg5[%c0_15, %c0_16], %18 {strides = array<i32>} : memref<8x1xf32, #tpu.memory_space<vmem>>, vector<8x1xf32>,
    %c0_17 = arith.constant 0 : index
    %c0_18 = arith.constant 0 : index
    %32 = vector.load %arg7[%c0_17, %c0_18] : memref<8x1xf32, #tpu.memory_space<vmem>>, vector<8x1xf32>
    %33 = arith.addf %32, %16 : vector<8x1xf32>
    %c0_19 = arith.constant 0 : index
    %c0_20 = arith.constant 0 : index
    %34 = vector.load %arg7[%c0_19, %c0_20] : memref<8x1xf32, #tpu.memory_space<vmem>>, vector<8x1xf32>
    tpu.vector_store %arg7[%c0_19, %c0_20], %33 {strides = array<i32>} : memref<8x1xf32, #tpu.memory_space<vmem>>, vector<8x1xf32>,
    %c0_i32_21 = arith.constant 0 : i32
    %35 = arith.cmpi eq, %arg1, %c0_i32_21 : i32
    %36 = arith.extui %35 : i1 to i32
    %c0_i32_22 = arith.constant 0 : i32
    %37 = arith.cmpi ne, %36, %c0_i32_22 : i32
    scf.if %37 {
      %c0_23 = arith.constant 0 : index
      %c0_24 = arith.constant 0 : index
      %38 = vector.load %arg5[%c0_23, %c0_24] : memref<8x1xf32, #tpu.memory_space<vmem>>, vector<8x1xf32>
      %c0_25 = arith.constant 0 : index
      %c0_26 = arith.constant 0 : index
      %39 = vector.load %arg6[%c0_25, %c0_26] : memref<8x1xf32, #tpu.memory_space<vmem>>, vector<8x1xf32>
      %40 = math.log %39 : vector<8x1xf32>
      %41 = arith.addf %38, %40 : vector<8x1xf32>
      %c0_27 = arith.constant 0 : index
      %c0_28 = arith.constant 0 : index
      %42 = vector.load %arg7[%c0_27, %c0_28] : memref<8x1xf32, #tpu.memory_space<vmem>>, vector<8x1xf32>
      %43 = arith.subf %41, %42 : vector<8x1xf32>
      %44 = tpu.iota {dimensions = array<i32: 0>} : vector<8x1xi32>
      %c8_i32 = arith.constant 8 : i32
      %45 = arith.muli %arg0, %c8_i32 : i32
      %46 = vector.broadcast %45 : i32 to vector<8x1xi32>
      %47 = arith.addi %44, %46 : vector<8x1xi32>
      %c8_i32_29 = arith.constant 8 : i32
      %48 = vector.broadcast %c8_i32_29 : i32 to vector<8x1xi32>
      %49 = arith.cmpi slt, %47, %48 : vector<8x1xi32>
      %cst_30 = arith.constant 0.000000e+00 : f32
      %50 = vector.broadcast %cst_30 : f32 to vector<8x1xf32>
      %51 = arith.select %49, %43, %50 : vector<8x1xi1>, vector<8x1xf32>
      %52 = vector.shape_cast %51 : vector<8x1xf32> to vector<1x8x1xf32>
      %cst_31 = arith.constant dense<0.000000e+00> : vector<1xf32>
      %53 = vector.multi_reduction <add>, %52, %cst_31 [1, 2] : vector<1x8x1xf32> to vector<1xf32>
      %54 = vector.shape_cast %53 : vector<1xf32> to vector<1x1x1xf32>
      %55 = vector.extract %54[0, 0, 0] : f32 from vector<1x1x1xf32>
      %c0_32 = arith.constant 0 : index
      %c0_33 = arith.constant 0 : index
      %56 = memref.load %arg4[%c0_32, %c0_33] : memref<1x1xf32, #tpu.memory_space<smem>>
      memref.store %55, %arg4[%c0_32, %c0_33] : memref<1x1xf32, #tpu.memory_space<smem>>
    } else {
    }
    return
  }
  func.func @transform_0(%arg0: i32, %arg1: i32) -> (i32, i32) {
    %c0_i32 = arith.constant 0 : i32
    return %arg0, %arg1 : i32, i32
  }
  func.func @transform_1(%arg0: i32, %arg1: i32) -> (i32, i32) {
    %c0_i32 = arith.constant 0 : i32
    %c0_i32_0 = arith.constant 0 : i32
    return %arg0, %c0_i32 : i32, i32
  }
  func.func @transform_2(%arg0: i32, %arg1: i32) -> (i32, i32) {
    %c0_i32 = arith.constant 0 : i32
    %c0_i32_0 = arith.constant 0 : i32
    return %arg0, %c0_i32 : i32, i32
  }
}

</mosaic_0001>

<bundles_post_ra>
// kernel: tpu_custom_call.1
= control target key start
LH: loop header
LB: loop body
LE: loop exit
PB: predicated region body
PF: predicated region fallthrough
CT: control target
= control target key end

     0   :  { %vm27_vm0 = vcmask 261120   ;;  %s168_s0 = inlined_call_operand.vmem [shape: f32[8,32], index: 0, kind: input, shape index: {}]   ;;  %s169_s1 = inlined_call_operand.vmem [shape: s32[8,1], index: 1, kind: input, shape index: {}]   ;;  %s170_s2 = inlined_call_operand.hbm [shape: f32[1,1], index: 2, kind: output, shape index: {}]  }
   0x1   :  { %v20_v0 = vld [vmem:[%s168_s0] sm:$0xff] }
   0x2   :  { %7 = vsyncpa [#allocation6], 0  ;;  %v28_v1 = vsel %vm27_vm0, %v20_v0, -inf  ;;  %vm16_vm1 = vcmask 7168   ;;  %v130_v2 = vmov -inf   ;;  %v131_v3 = vmov 0  }
   0x3   :  { %29 = vmax.xlane.f32.xlu0 %v28_v1  ;;  %17 = vst.msk [vmem:[#allocation2] sm:$0xff] %vm16_vm1, %v130_v2  ;;  %113 = vset.pattern.permute.xlu1 %v131_v3  ;;  %v21_v4 = vld [vmem:[%s169_s1] sm:$0xff]  ;;  %v132_v5 = vmov 0.0   ;;  %v22_v13 = vlaneseq  ;;  %s133_s1 = smov [#allocation5]  }
   0x4   :  { %112 = vset.pattern.permute.xlu0 %v131_v3  ;;  %32 = vperm.xlu1 %113, %v21_v4   ;;  %18 = vst.msk [vmem:[#allocation3] sm:$0xff] %vm16_vm1, %v132_v5  ;;  %19 = vst.msk [vmem:[#allocation4] sm:$0xff] %vm16_vm1, %v132_v5 }
   0x5   :  { %v23_v14 = vand.u32 127, %v22_v13 }
   0xa   :  { %v39_v6 = vld [vmem:[#allocation2] sm:$0xff] }
   0xb   :  { %v52_v22 = vld [vmem:[#allocation3] sm:$0xff]  ;;  %v61_v26 = vld [vmem:[#allocation4] sm:$0xff] }
  0x7f   :  { %v33_v15 = vpop.permute.xlu1 %32 }
  0x80   :  { %vm34_vm2 = vcmp.eq.s32.totalorder %v23_v14, %v33_v15 }
  0x81   :  { %v35_v17 = vsel %vm34_vm2, %v20_v0, 0.0 }
  0x82   :  { %v36_v19 = vsel %vm27_vm0, %v35_v17, 0.0 }
  0x8c   :  { %v30_v7 = vpop.xlane.xlu0 %29 }
  0x8d   :  { %v40_v8 = vmax.f32 %v39_v6, %v30_v7 }
  0x8f   :  { %v41_v9 = vsub.f32 %v39_v6, %v40_v8  ;;  %60 = vst.msk [vmem:[#allocation2] sm:$0xff] %vm16_vm1, %v40_v8  ;;  %46 = vperm.xlu0 %112, %v40_v8  }
  0x91   :  { %v42_v20 = vmul.f32 1.442695, %v41_v9 }
  0x96   :  { %v67_v32 = vld [vmem:[#allocation2] sm:$0xff] }
 0x10a   :  { %v47_v10 = vpop.permute.xlu0 %46 }
 0x10b   :  { %v49_v11 = vsub.f32 %v20_v0, %v47_v10 }
 0x10d   :  { %v50_v12 = vmul.f32 1.442695, %v49_v11 }
 0x10f   :  { %114 = vpow2.f32 %v50_v12 }
 0x110   :  { %116 = vpow2.f32 %v42_v20 }
 0x11c   :  { %v115_v16 = vpop.eup %114 }
 0x11d   :  { %v54_v18 = vsel %vm27_vm0, %v115_v16, 0.0  ;;  %v117_v21 = vpop.eup %116 }
 0x11e   :  { %55 = vadd.xlane.f32.xlu1 %v54_v18  ;;  %v53_v23 = vmul.f32 %v117_v21, %v52_v22 }
 0x122   :  { %37 = vadd.xlane.f32.xlu1 %v36_v19 }
 0x1a7   :  { %v56_v24 = vpop.xlane.xlu1 %55 }
 0x1a8   :  { %v57_v25 = vadd.f32 %v56_v24, %v53_v23 }
 0x1aa   :  { %59 = vst.msk [vmem:[#allocation3] sm:$0xff] %vm16_vm1, %v57_v25 }
 0x1ab   :  { %v38_v27 = vpop.xlane.xlu1 %37 }
 0x1ac   :  { %v62_v28 = vadd.f32 %v61_v26, %v38_v27 }
 0x1ae   :  { %63 = vst.msk [vmem:[#allocation4] sm:$0xff] %vm16_vm1, %v62_v28 }
 0x1b1   :  { %v68_v29 = vld [vmem:[#allocation3] sm:$0xff] }
 0x1b2   :  { %118 = vlog2.f32 %v68_v29 }
 0x1b5   :  { %v72_v33 = vld [vmem:[#allocation4] sm:$0xff] }
 0x1bf   :  { %v119_v30 = vpop.eup %118 }
 0x1c0   :  { %v70_v31 = vmul.f32 0.6931472, %v119_v30 }
 0x1c2   :  { %v71_v34 = vadd.f32 %v70_v31, %v67_v32 }
 0x1c4   :  { %v73_v35 = vsub.f32 %v71_v34, %v72_v33 }
 0x1c6   :  { %v81_v36 = vsel %vm16_vm1, %v73_v35, 0.0 }
 0x1c7   :  { %82 = vadd.xlane.f32.xlu1 %v81_v36 }
 0x250   :  { %v83_v37 = vpop.xlane.xlu1 %82 }
 0x251   :  { %v84_v38 = vrot.slane %v83_v37, 4 }
 0x253   :  { %v85_v39 = vadd.f32 %v84_v38, %v83_v37 }
 0x255   :  { %v86_v40 = vrot.slane %v85_v39, 2 }
 0x257   :  { %v87_v41 = vadd.f32 %v86_v40, %v85_v39 }
 0x259   :  { %v88_v42 = vrot.slane %v87_v41, 1 }
 0x25b   :  { %v89_v43 = vadd.f32 %v88_v42, %v87_v41 }
 0x25d   :  { %106 = vpush %v89_v43 }
 0x28e   :  { %s107_s0 = spop %106 }
 0x28f   :  { %92 = sst [smem:[#allocation5]] %s107_s0 }
 0x290   :  { %100 = dma.smem_to_hbm %s133_s1, 16, %s170_s2, [#allocation6]  }
 0x291   :  { %128 = dma.done.wait [#allocation6], 16  }
 0x292   :  { %129 = vsyncadd [#allocation6], 4294967280 }
 0x293   :  { %104 = sfence }
 0x294   :  { %105 = vsyncpa [#allocation6], 1 }

</bundles_post_ra>
